<compile_context>
chip_gen: v5e
topology: v5e:2x2
jax: 0.10.0
libtpu: 0.0.40
codegen_flags: <defaults>
</compile_context>

<pallas_src>
import jax
import jax.numpy as jnp
from jax.experimental import pallas as pl
from jax.experimental.pallas import tpu as pltpu


def _round_up(v, m):
    return ((v + m - 1) // m) * m


# ----------------------------- Pallas kernel ------------------------------ #
def _conv_matmul_kernel(w_ref, b_ref, patches_ref, out_ref):
    # w_ref       : (O, K)       flattened conv weights (O = out channels)
    # b_ref       : (O, 1)       bias column
    # patches_ref : (K, TILE_P)  im2col activation tile, lane axis = pixels
    # out_ref     : (O, TILE_P)  lane-dense output tile
    acc = jnp.dot(w_ref[...], patches_ref[...],
                  preferred_element_type=jnp.float32)
    out_ref[...] = (acc + b_ref[...]).astype(out_ref.dtype)


def _conv_matmul(weight2d, bias_col, patches, tile_p=None):
    """(O, P) = weight2d(O, K) @ patches(K, P) + bias, tiled over P."""
    O, K = weight2d.shape
    K2, P = patches.shape
    assert K == K2

    if tile_p is None:
        # At least two lane tiles so both v7x TensorCores get work and the
        # prefetch/compute/writeback pipeline actually overlaps; cap at 1024
        # lanes so the double-buffered per-step footprint
        # 2 * (K + O) * tile_p * 4 B (< ~0.4 MiB here) stays far below the
        # scoped-VMEM default on every generation (v5e/v6e 128 MiB, v7x 64 MiB).
        tile_p = min(1024, _round_up(pl.cdiv(P, 2), 128))

    # Pad the lane axis so every block is full width (unmasked vst) and the
    # grid divides evenly.  Padded columns are zeros -> bias only; sliced off.
    p_pad = _round_up(P, tile_p)
    if p_pad != P:
        patches = jnp.pad(patches, ((0, 0), (0, p_pad - P)))
    grid = (p_pad // tile_p,)

    out = pl.pallas_call(
        _conv_matmul_kernel,
        out_shape=jax.ShapeDtypeStruct((O, p_pad), jnp.float32),
        grid_spec=pltpu.PrefetchScalarGridSpec(
            num_scalar_prefetch=0,
            grid=grid,
            in_specs=[
                pl.BlockSpec((O, K), lambda i: (0, 0)),      # weights (resident)
                pl.BlockSpec((O, 1), lambda i: (0, 0)),      # bias    (resident)
                pl.BlockSpec((K, tile_p), lambda i: (0, i)), # patches tile
            ],
            out_specs=pl.BlockSpec((O, tile_p), lambda i: (0, i)),
        ),
        compiler_params=pltpu.CompilerParams(
            dimension_semantics=("parallel",)),
    )(weight2d, bias_col, patches)

    return out[:, :P]


# ----------------------- wrapped module: Conv2d --------------------------- #
class PallasConv2d:
    """Conv2d(C_in, C_out, 3x3, stride=1, padding=1), NCHW, via Pallas matmul."""

    def __init__(self, in_channels, out_channels, kernel_size=3, padding=1,
                 key=None):
        self.cin = in_channels
        self.cout = out_channels
        self.k = kernel_size
        self.pad = padding
        key = jax.random.PRNGKey(0) if key is None else key
        kw, kb = jax.random.split(key)
        fan_in = in_channels * kernel_size * kernel_size
        bound = 1.0 / (fan_in ** 0.5)
        # deterministic init (matches torch Conv2d default U(-bound, bound))
        self.weight = jax.random.uniform(
            kw, (out_channels, in_channels, kernel_size, kernel_size),
            minval=-bound, maxval=bound, dtype=jnp.float32)
        self.bias = jax.random.uniform(
            kb, (out_channels,), minval=-bound, maxval=bound,
            dtype=jnp.float32)

    def forward(self, x):
        # x: (N, C, H, W) float32
        N, C, H, W = x.shape
        k, p = self.k, self.pad
        Ho = H + 2 * p - k + 1
        Wo = W + 2 * p - k + 1

        # Layout-clean im2col: only leading-axis permutes, and the (K, P)
        # matrix is produced directly with P = N*Ho*Wo on the minor (lane)
        # axis — no minor-dim transpose of the 9x-expanded tensor.
        xc = jnp.transpose(x, (1, 0, 2, 3))                    # (C, N, H, W)
        x_pad = jnp.pad(xc, ((0, 0), (0, 0), (p, p), (p, p)))  # (C, N, H+2p, W+2p)
        # stack over (kh, kw) on a leading axis: (C, k*k, N, Ho, Wo)
        cols = jnp.stack(
            [x_pad[:, :, i:i + Ho, j:j + Wo]
             for i in range(k) for j in range(k)],
            axis=1)
        K = C * k * k
        P = N * Ho * Wo
        patches = cols.reshape(K, P)                           # (K, P) lane-dense

        weight2d = self.weight.reshape(self.cout, K)           # (O, K)
        bias_col = self.bias.reshape(self.cout, 1)             # (O, 1)

        out_op = _conv_matmul(weight2d, bias_col, patches)     # (O, P)

        # (O, N, Ho, Wo) -> NCHW: leading-axis permute only (cheap).
        out = out_op.reshape(self.cout, N, Ho, Wo).transpose(1, 0, 2, 3)
        return out


# ------------------------------- XaiHook ----------------------------------- #
class XaiHook:
    """JAX port of torchxai XaiHook: forwards to the wrapped module and
    (optionally) captures (module, input, output) via a forward hook."""

    def __init__(self, module):
        self.module = module
        self.hook_fn = None
        self._hook_active = False

    def forward(self, x):
        out = self.module.forward(x)
        if self._hook_active and self.hook_fn is not None:
            # forward hook: i/o mirror PyTorch semantics (input is a tuple)
            ret = self.hook_fn(self.module, (x,), out)
            if ret is not None:
                out = ret
        return out

    __call__ = forward

    def register_hook(self, backward=False, hook_fn=None):
        # TODO(synk): backward hooks (grad_input/grad_output interception) have
        # no direct Pallas/JAX-module equivalent; only forward hooks supported.
        if hook_fn is None:
            self.hook_fn = self.default_hook_fn
        else:
            self.hook_fn = hook_fn
        self._hook_active = True

    def default_hook_fn(self, m, i, o):
        self.m = m
        self.i = i
        self.o = o

    def zero_grad(self):
        pass  # parameters are plain jnp arrays; no grads stored

    def close(self):
        self._hook_active = False
        self.hook_fn = None


# --------------------------------- main ------------------------------------ #
if __name__ == "__main__":
    key = jax.random.PRNGKey(0)
    k_x, k_w = jax.random.split(key)

    N, C, H, W = 2, 4, 16, 16
    x = jax.random.normal(k_x, (N, C, H, W), dtype=jnp.float32)

    conv = PallasConv2d(in_channels=4, out_channels=8, kernel_size=3,
                        padding=1, key=k_w)
    hook = XaiHook(conv)
    hook.register_hook(backward=False)  # default hook: capture (m, i, o)

    out = hook(x)
    out = jax.block_until_ready(out)

    # sanity check against XLA's native conv
    ref = jax.lax.conv_general_dilated(
        x, conv.weight, window_strides=(1, 1), padding=((1, 1), (1, 1)),
        dimension_numbers=("NCHW", "OIHW", "NCHW")) \
        + conv.bias[None, :, None, None]
    assert out.shape == (N, 8, H, W)
    assert jnp.allclose(out, ref, atol=1e-4, rtol=1e-4)
    assert hook.o.shape == out.shape  # hook captured the forward output

    print("KERNEL_OK")
</pallas_src>

<mosaic_0001>
module attributes {stable_mosaic.version = 11 : i64} {
  func.func @_conv_matmul_kernel(%arg0: i32, %arg1: memref<8x36xf32, #tpu.memory_space<vmem>>, %arg2: memref<8x1xf32, #tpu.memory_space<vmem>>, %arg3: memref<36x256xf32, #tpu.memory_space<vmem>>, %arg4: memref<8x256xf32, #tpu.memory_space<vmem>>) attributes {dimension_semantics = [#tpu.dimension_semantics<parallel>], iteration_bounds = array<i64: 2>, scalar_prefetch = 0 : i64, scratch_operands = 0 : i64, tpu.core_type = #tpu.core_type<tc>, window_params = [{pipeline_mode = #tpu.pipeline_mode<synchronous>, transform_indices = @transform_0, window_bounds = array<i64: 8, 36>}, {pipeline_mode = #tpu.pipeline_mode<synchronous>, transform_indices = @transform_1, window_bounds = array<i64: 8, 1>}, {transform_indices = @transform_2, window_bounds = array<i64: 36, 256>}, {transform_indices = @transform_3, window_bounds = array<i64: 8, 256>}]} {
    %c0 = arith.constant 0 : index
    %c0_0 = arith.constant 0 : index
    %0 = vector.load %arg1[%c0, %c0_0] : memref<8x36xf32, #tpu.memory_space<vmem>>, vector<8x36xf32>
    %c0_1 = arith.constant 0 : index
    %c0_2 = arith.constant 0 : index
    %1 = vector.load %arg3[%c0_1, %c0_2] : memref<36x256xf32, #tpu.memory_space<vmem>>, vector<36x256xf32>
    %cst = arith.constant dense<0.000000e+00> : vector<8x256xf32>
    %2 = tpu.matmul %0, %1, %cst {dimension_numbers = #tpu.dot_dimension_numbers<[1], [0], [0], [1], [0, 0, 1, 1], [], []>} : vector<8x36xf32>, vector<36x256xf32>, vector<8x256xf32> -> vector<8x256xf32>
    %c0_3 = arith.constant 0 : index
    %c0_4 = arith.constant 0 : index
    %3 = vector.load %arg2[%c0_3, %c0_4] : memref<8x1xf32, #tpu.memory_space<vmem>>, vector<8x1xf32>
    %4 = vector.broadcast %3 : vector<8x1xf32> to vector<8x256xf32>
    %5 = arith.addf %2, %4 : vector<8x256xf32>
    %c0_5 = arith.constant 0 : index
    %c0_6 = arith.constant 0 : index
    %6 = vector.load %arg4[%c0_5, %c0_6] : memref<8x256xf32, #tpu.memory_space<vmem>>, vector<8x256xf32>
    tpu.vector_store %arg4[%c0_5, %c0_6], %5 {strides = array<i32>} : memref<8x256xf32, #tpu.memory_space<vmem>>, vector<8x256xf32>,
    return
  }
  func.func @transform_0(%arg0: i32) -> (i32, i32) {
    %c0_i32 = arith.constant 0 : i32
    %c0_i32_0 = arith.constant 0 : i32
    %c0_i32_1 = arith.constant 0 : i32
    return %c0_i32, %c0_i32_0 : i32, i32
  }
  func.func @transform_1(%arg0: i32) -> (i32, i32) {
    %c0_i32 = arith.constant 0 : i32
    %c0_i32_0 = arith.constant 0 : i32
    %c0_i32_1 = arith.constant 0 : i32
    return %c0_i32, %c0_i32_0 : i32, i32
  }
  func.func @transform_2(%arg0: i32) -> (i32, i32) {
    %c0_i32 = arith.constant 0 : i32
    %c0_i32_0 = arith.constant 0 : i32
    return %c0_i32, %arg0 : i32, i32
  }
  func.func @transform_3(%arg0: i32) -> (i32, i32) {
    %c0_i32 = arith.constant 0 : i32
    %c0_i32_0 = arith.constant 0 : i32
    return %c0_i32, %arg0 : i32, i32
  }
}

</mosaic_0001>

<bundles_post_ra>
// kernel: tpu_custom_call.1
= control target key start
LH: loop header
LB: loop body
LE: loop exit
PB: predicated region body
PF: predicated region fallthrough
CT: control target
= control target key end

     0   :  { %8 = vsyncpa [#allocation3], 0  ;;  %s669_s0 = inlined_call_operand.vmem [shape: f32[8,36], index: 0, kind: input, shape index: {}]   ;;  %s670_s1 = inlined_call_operand.vmem [shape: f32[8,1], index: 1, kind: input, shape index: {}]   ;;  %s671_s2 = inlined_call_operand.hbm [shape: f32[36,512], index: 2, kind: input, shape index: {}]   ;;  %s672_s3 = inlined_call_operand.hbm [shape: f32[8,512], index: 3, kind: output, shape index: {}]  }
   0x1   :  { %10 = vsyncpa [#allocation3 + $0x1], 0 }
   0x2   :  { %11 = vsyncpa [#allocation4], 0 }
   0x3   :  { %13 = vsyncpa [#allocation4 + $0x1], 0  ;;  %s543_s12 = smov 0   ;;  %s545_s13 = smov 0  }
   0x4   :  { %s547_s14 = smov 0   ;;  %s549_s15 = smov 0  }
   0x5 LB: > { %s564_s16 = sadd.s32 4294967295, %s517_s15   ;;  %s350_s17 = sadd.s32 4294967294, %s517_s15   ;;  %s517_s15 = sphi %s549_s15, %s680_s15   ;;  %s513_s14 = sphi %s547_s14, %s679_s14   ;;  %s509_s13 = sphi %s545_s13, %s678_s13   ;;  %s505_s12 = sphi %s543_s12, %s677_s12  }
   0x6   : > { %s568_s18 = sadd.s32 1, %s517_s15   ;;  %s68_s19 = sadd.s32 1, %s513_s14 }
   0x7   : > { %s65_s20 = ssub.s32 %s517_s15, %s568_s18  ;;  %p75_p0 = scmp.ne.s32.totalorder %s513_s14, %s509_s13 }
   0x8   : > { %p66_p1 = scmp.eq.s32.totalorder %s65_s20, 0  ;;  %p76_p2 = scmp.eq.s32.totalorder %s517_s15, 0 }
   0x9   : > { %p81_p3 = scmp.ne.s32.totalorder %s509_s13, %s505_s12  ;;  %p82_p4 = scmp.eq.s32.totalorder %s564_s16, 0 }
   0xa   : > { %s580_s21 = scalar_select %p66_p1, %s513_s14, %s68_s19  }
   0xb   : > { %p77_p5 = por %p76_p2, %p75_p0  ;;  %p582_p6 = por %p82_p4, %p81_p3 }
   0xc   : > { %p105_p7 = scmp.eq.s32.totalorder %s564_s16, 1  ;;  %p111_p8 = scmp.eq.s32.totalorder %s350_s17, 1 }
   0xd   : > { %p352_p9 = scmp.ge.s32.totalorder %s517_s15, 2  ;;  %p382_p10 = scmp.lt.s32.totalorder %s517_s15, 2 }
   0xe   : > { %p589_p11 = por %p105_p7, %p75_p0  ;;  %p593_p12 = por %p111_p8, %p81_p3 }
   0xf   : > { %s137_s25 = sand.u32 1, %s513_s14   ;;  %s366_s26 = sshll.u32 %s517_s15, 4 }
  0x10   : > { %s368_s27 = smul.u32 80, %s137_s25  ;;  %s146_s30 = scalar_lea.hbm %s671_s2, %s366_s26 }
  0x11   : > { %p602_p13 = pnand %p382_p10, %p77_p5  ;;  %s147_s5 = sshll.u32 %s146_s30, 4  ;;  %s148_s5 = int_to_ptr.hbm [resolvable:$true] %s147_s5 }
  0x12   : > { %s141_s6 = scalar_lea.vmem [#allocation2], %s368_s27  ;;  %p355_p0 = scmp.ge.s32.totalorder %s517_s15, 1 }
  0x13   : > { %s149_s7 = sshll.u32 %s141_s6, 4  ;;  %s138_s8 = scalar_lea.sflag [#allocation3], %s137_s25  ;;  %s150_s7 = int_to_ptr.vmem [resolvable:$true] %s149_s7 }
  0x14   : > { %s421_s9 = sshra.s32 %s148_s5, 4  ;;  %p425_p2 = pneg %p602_p13  ;;  %s422_s9 = int_to_ptr.hbm [resolvable:$true] %s421_s9 }
  0x15   : > { %s423_s10 = scalar_lea.hbm %s422_s9, 80  ;;  %s428_s19 = scalar_lea.hbm %s671_s2, 160 }
  0x16   : > { %p424_p1 = scmp.ne.s32.totalorder %s422_s9, %s423_s10  ;;  %p429_p5 = scmp.lt.s32.totalorder %s422_s9, %s671_s2 }
  0x17   : > { %p430_p7 = scmp.lt.s32.totalorder %s428_s19, %s423_s10 }
  0x18   : > { %p426_p3 = pnand %p425_p2, %p424_p1 }
  0x19   : > { %p431_p8 = por %p430_p7, %p429_p5 }
  0x1a   : > { %p427_p4 = pneg %p426_p3 }
  0x1c   : > { %p432_p10 = pnand %p431_p8, %p427_p4 }
  0x1e   : > { %435 = shalt.err (!%p432_p10)
}
  0x1f   : > { %s519_s25 = smov 512   ;;  %s520_s27 = smov 256  }
  0x20   : > { %s521_s28 = smov 16   ;;  %p157_p1 = scmp.lt.s32.totalorder %s517_s15, 3 }
  0x21   : > { %377 = dma.hbm_to_vmem [thread:$0]  (!%p602_p13), %s148_s5, 1280, %s150_s7, %s138_s8, %s519_s25, %s520_s27, %s521_s28  }
  0x22   : > { %p158_p2 = pnand %p355_p0, %p157_p1 }
  0x23   : > { %s621_s29 = sand.u32 (!%p158_p2), 1, %s509_s13  }
  0x24   : > { %161 = sbr.rel (%p158_p2) target bundleno = 184 (0xb8), region = 32  ;;  %s164_s6 = scalar_lea.sflag (!%p158_p2), [#allocation3], %s621_s29 }
  0x25   : > { %s369_s30 = smul.u32 (!%p158_p2), 80, %s621_s29 }
  0x27   : > { %s167_s9 = scalar_lea.vmem (!%p158_p2), [#allocation2], %s369_s30 }
  0x29   : > { %496 = dma.done.wait (%p582_p6), %s164_s6, 1280  }
  0x2a   : > { %498 = vsyncadd (%p582_p6), %s164_s6, 4294966016  ;;  %v522_v0 = vmov 0   ;;  %vm214_vm0 = vcmask 1043456   ;;  %v202_v1 = vld [vmem:[%s167_s9 + $0x40] sm:$0xf]  ;;  %v200_v3 = vld [vmem:[%s167_s9 + $0x30] sm:$0xff] }
  0x2b   : > { %420 = vset.pattern.permute.xlu0 %v522_v0  ;;  %v203_v2 = vld [vmem:[%s167_s9 + $0x48] sm:$0xf]  ;;  %357 = vmatpush.msk.msra.mxu0 %vm214_vm0, %v202_v1  ;;  %v201_v4 = vld [vmem:[%s167_s9 + $0x38] sm:$0xff]  ;;  %v198_v5 = vld [vmem:[%s167_s9 + $0x20] sm:$0xff]  ;;  %vm210_vm1 = vcmask 293888   ;;  %s356_s8 = sshll.u32 %s621_s29, 4 }
  0x2c   : > { %359 = vmatpush.msk.msra.mxu1 %vm214_vm0, %v203_v2  ;;  %v199_v6 = vld [vmem:[%s167_s9 + $0x28] sm:$0xff]  ;;  %v204_v7 = vld [vmem:[%s670_s1] sm:$0xff]  ;;  %v197_v9 = vld [vmem:[%s167_s9 + $0x18] sm:$0xff]  ;;  %s367_s10 = sshll.u32 %s564_s16, 4  ;;  %s190_s20 = scalar_lea.vmem [#allocation5], %s356_s8 }
  0x2d   : > { %233 = vmatpush.msra.mxu0 %v200_v3  ;;  %v196_v8 = vld [vmem:[%s167_s9 + $0x10] sm:$0xff]  ;;  %207 = vperm.xlu0 %420, %v204_v7   ;;  %v194_v10 = vld [vmem:[%s167_s9] sm:$0xff]  ;;  %v195_v11 = vld [vmem:[%s167_s9 + $0x8] sm:$0xff]  ;;  %s275_s19 = scalar_lea.hbm %s672_s3, %s367_s10  ;;  %s277_s26 = sshll.u32 %s190_s20, 4  ;;  %s278_s26 = int_to_ptr.vmem [resolvable:$true] %s277_s26 }
  0x2e   : > { %253 = vmatpush.msra.mxu1 %v201_v4  ;;  %v193_v12 = vld [vmem:[%s669_s0] sm:$0xff]  ;;  %s279_s25 = sshll.u32 %s275_s19, 4  ;;  %s264_s27 = scalar_lea.sflag [#allocation4], %s621_s29  ;;  %s280_s25 = int_to_ptr.hbm [resolvable:$true] %s279_s25 }
  0x2f   : > { %234 = vmatpush.msra.mxu0 %v198_v5  ;;  %s465_s28 = sshra.s32 %s280_s25, 4  ;;  %s471_s9 = scalar_lea.hbm %s672_s3, 32  ;;  %s466_s28 = int_to_ptr.hbm [resolvable:$true] %s465_s28 }
  0x30   : > { %254 = vmatpush.msra.mxu1 %v199_v6  ;;  %s467_s16 = scalar_lea.hbm %s466_s28, 16  ;;  %p472_p3 = scmp.lt.s32.totalorder %s466_s28, %s672_s3 }
  0x31   : > { %235 = vmatpush.msra.mxu0 %v196_v8  ;;  %p468_p6 = scmp.ne.s32.totalorder %s466_s28, %s467_s16  ;;  %p473_p4 = scmp.lt.s32.totalorder %s471_s9, %s467_s16 }
  0x32   : > { %255 = vmatpush.msra.mxu1 %v197_v9 }
  0x33   : > { %236 = vmatpush.msra.mxu0 %v194_v10  ;;  %p469_p13 = pnand %p468_p6, %p589_p11  ;;  %p474_p5 = por %p473_p4, %p472_p3 }
  0x34   : > { %256 = vmatpush.msra.mxu1 %v195_v11  ;;  %358 = vmatmul.msk.f32.vlgmr.msra.gmra.mxu0 %vm210_vm1, %v193_v12 }
  0x35   : > { %360 = vmatmul.msk.f32.vlgmr.msra.gmra.mxu1 %vm210_vm1, %v193_v12  ;;  %p470_p0 = pneg %p469_p13 }
  0x37   : > { %p475_p7 = pnand %p474_p5, %p470_p0 }
  0x9f   : > { %v208_v13 = vpop.permute.xlu0 %207 }
  0xb1   : > { %v238_v14 = vpop.f32.mrf.mxu0 }
  0xb2   : > { %v258_v15 = vpop.f32.mrf.mxu1  ;;  %v239_v16 = vadd.f32 %v238_v14, %v208_v13 }
  0xb3   : > { %v259_v17 = vadd.f32 %v258_v15, %v208_v13 }
  0xb4   : > { %261 = vst [vmem:[%s190_s20] sm:$0xff] %v239_v16 }
  0xb5   : > { %262 = vst [vmem:[%s190_s20 + $0x8] sm:$0xff] %v259_v17 }
  0xb6   : > { %478 = shalt.err (!%p475_p7)
}
  0xb7   : > { %372 = dma.vmem_to_hbm [thread:$0]  (%p589_p11), %s278_s26, 256, %s280_s25, %s264_s27  }
  0xb8 PF: > { %s291_s29 = sand.u32 1, %s505_s12   ;;  %p379_p8 = pnand %p352_p9, %p593_p12 }
  0xb9   : > { %s292_s22 = scalar_lea.sflag [#allocation4], %s291_s29 }
  0xba   : > { %p380_p10 = pneg %p379_p8 }
  0xbc   : > { %500 = dma.done.wait (%p380_p10), %s292_s22, 256  }
  0xbd   : > { %502 = vsyncadd (%p380_p10), %s292_s22, 4294967040  ;;  %p16_p1 = scmp.ge.s32.totalorder %s568_s18, 4   ;;  %s677_s12 = smov %s509_s13 }
  0xbe   : > { %s678_s13 = smov %s513_s14  ;;  %s679_s14 = smov %s580_s21 }
  0xbf   : > { %s680_s15 = smov %s568_s18  ;;  %18 = sbr.rel (!%p16_p1) target bundleno = 5 (0x5), region = 77 }
  0xc4   :  { %298 = vsyncpa [#allocation3], 1 }
  0xc5   :  { %300 = vsyncpa [#allocation3 + $0x1], 1 }
  0xc6   :  { %301 = vsyncpa [#allocation4], 1 }
  0xc7   :  { %303 = vsyncpa [#allocation4 + $0x1], 1 }

</bundles_post_ra>
